<compile_context>
chip_gen: v7x
topology: tpu7x:2x2x1
jax: 0.10.0
libtpu: 0.0.40
codegen_flags: <defaults>
</compile_context>

<pallas_src>
import functools
import math

import jax
import jax.numpy as jnp
from jax.experimental import pallas as pl
from jax.experimental.pallas import tpu as pltpu


# ----------------------------------------------------------------------------
# Pass 1: fused Q/K/V input projection, emitted head-major in bf16.
# ----------------------------------------------------------------------------
def _qkv_proj_kernel(x_ref, w_ref, b_ref, o_ref, *, heads, head_dim):
    # x_ref: (1, block_r, E)    bf16  row tile of Q, K or V (selected by grid index)
    # w_ref: (1, E, E)          bf16  pre-transposed weight [E_in, E_out]
    # b_ref: (1, 1, E)          f32   bias (Q weight/bias pre-scaled by 1/sqrt(D))
    # o_ref: (1, H, block_r, D) bf16  head-major projected tile
    x = x_ref[0]                                                   # (block_r, E)
    y = jnp.dot(x, w_ref[0], preferred_element_type=jnp.float32) + b_ref[0]
    y = y.astype(jnp.bfloat16)
    # Head split paid once per element here, so the attention hot loop only ever
    # sees lane-aligned head-major tiles.
    for h in range(heads):
        o_ref[0, h] = y[:, h * head_dim:(h + 1) * head_dim]


# ----------------------------------------------------------------------------
# Pass 2: flash attention (online softmax) + fused output projection.
# ----------------------------------------------------------------------------
def _flash_attn_kernel(q_ref, k_ref, v_ref, wo_ref, bo_ref, o_ref,
                       m_sc, l_sc, acc_sc, stage_sc, *, heads, head_dim):
    ki = pl.program_id(2)
    nk = pl.num_programs(2)

    @pl.when(ki == 0)
    def _init():
        m_sc[...] = jnp.full(m_sc.shape, -jnp.inf, dtype=m_sc.dtype)
        l_sc[...] = jnp.zeros(l_sc.shape, dtype=l_sc.dtype)
        acc_sc[...] = jnp.zeros(acc_sc.shape, dtype=acc_sc.dtype)

    qh = q_ref[0]                                  # (H, Tq, D) bf16 (pre-scaled)
    kh = k_ref[0]                                  # (H, Tk, D) bf16
    vh = v_ref[0]                                  # (H, Tk, D) bf16

    # Batched over heads: single dot_generals instead of a per-head Python
    # unroll with sub-lane slices.
    # TODO(synk): verify via pl.lower_as_mlir that no vxpose of kh is emitted;
    # if it is, emit K transposed (H, D, T) from the projection pass instead.
    s = jnp.einsum("hqd,hkd->hqk", qh, kh,
                   preferred_element_type=jnp.float32)            # (H, Tq, Tk)
    m_prev = m_sc[...]                                            # (H, Tq, 1)
    m_new = jnp.maximum(m_prev, jnp.max(s, axis=-1, keepdims=True))
    alpha = jnp.exp(m_prev - m_new)
    p = jnp.exp(s - m_new)
    l_sc[...] = alpha * l_sc[...] + jnp.sum(p, axis=-1, keepdims=True)
    acc_sc[...] = alpha * acc_sc[...] + jnp.einsum(
        "hqk,hkd->hqd", p.astype(jnp.bfloat16), vh,
        preferred_element_type=jnp.float32)                       # (H, Tq, D)
    m_sc[...] = m_new

    @pl.when(ki == nk - 1)
    def _finalize():
        # Cheap VPU normalization per head into a (Tq, E) staging buffer laid
        # out exactly like the PyTorch .view(B, T, E) head concat, then ONE
        # full-E-deep output projection on the MXU.
        normed = acc_sc[...] * pl.reciprocal(l_sc[...], approx=True)  # (H,Tq,D)
        for h in range(heads):
            stage_sc[:, h * head_dim:(h + 1) * head_dim] = normed[h]
        out = jnp.dot(stage_sc[...].astype(jnp.bfloat16), wo_ref[...],
                      preferred_element_type=jnp.float32) + bo_ref[...]
        o_ref[0] = out.astype(o_ref.dtype)


# ----------------------------------------------------------------------------
# Wrapper: tiling / VMEM policy and the two pallas_calls.
# ----------------------------------------------------------------------------
def _pick_tile(t, target):
    """Largest multiple-of-8 divisor of `t` that is <= target (else t itself)."""
    target = max(8, min(t, int(target)))
    if t <= target:
        return t
    for cand in range((target // 8) * 8, 7, -8):
        if t % cand == 0:
            return cand
    # TODO(synk): pad T and mask the tail keys instead of a single full-T tile.
    return t


def _padded_bytes(shape, itemsize):
    """Rough VMEM footprint: last dim -> 128 lanes, 2nd-last -> sublane multiple."""
    s = list(shape)
    s[-1] = -(-s[-1] // 128) * 128
    if len(s) >= 2:
        sub = 8 * max(1, 4 // itemsize)
        s[-2] = -(-s[-2] // sub) * sub
    n = 1
    for d in s:
        n *= d
    return n * itemsize


def _device_vmem_budget():
    cap = 64 * 2 ** 20                     # conservative default (v7x per-core)
    try:                                   # narrow guard around hardware query only
        info = pltpu.get_tpu_info()
        cap = int(getattr(info, "vmem_capacity_bytes", cap))
    except Exception:
        pass
    return int(0.8 * cap)


def _proj_vmem_bytes(E, heads, head_dim, block_r):
    b = 0
    b += 2 * _padded_bytes((block_r, E), 2)                    # input tile x2 buf
    b += 2 * _padded_bytes((E, E), 2)                          # weight x2 buf
    b += 2 * _padded_bytes((1, E), 4)                          # bias
    b += 2 * _padded_bytes((heads, block_r, head_dim), 2)      # output tile
    b += 2 * _padded_bytes((block_r, E), 4)                    # temporaries
    return b


def _attn_vmem_bytes(E, heads, head_dim, block_q, block_k):
    b = 0
    b += 2 * _padded_bytes((heads, block_q, head_dim), 2)       # Q tile
    b += 2 * 2 * _padded_bytes((heads, block_k, head_dim), 2)   # K, V tiles
    b += 2 * _padded_bytes((E, E), 2)                           # Wo
    b += 2 * _padded_bytes((1, E), 4)                           # bo
    b += 2 * _padded_bytes((block_q, E), 4)                     # output tile
    b += 3 * _padded_bytes((heads, block_q, 1), 4)              # m, l (+ slack)
    b += _padded_bytes((heads, block_q, head_dim), 4)           # acc scratch
    b += _padded_bytes((block_q, E), 4)                         # staging scratch
    b += 3 * _padded_bytes((heads, block_q, block_k), 4)        # s / p temporaries
    return b


def attention_forward(Q, K, V, params, *, heads,
                      block_q=None, block_k=None, block_r=None):
    """Pallas multi-head attention matching Attention.forward (mask=None, no dropout)."""
    B, T, E = Q.shape
    assert E % heads == 0
    head_dim = E // heads
    out_dtype = Q.dtype
    scale = 1.0 / math.sqrt(head_dim)

    budget = _device_vmem_budget()

    # ---- tile selection: divisors of T (multiples of 8), shrunk to fit VMEM.
    block_r = _pick_tile(T, 256 if block_r is None else block_r)
    while _proj_vmem_bytes(E, heads, head_dim, block_r) > budget and block_r > 8:
        nb = _pick_tile(T, max(8, block_r // 2))
        if nb >= block_r:
            break
        block_r = nb

    block_q = _pick_tile(T, 256 if block_q is None else block_q)
    block_k = _pick_tile(T, 512 if block_k is None else block_k)
    while _attn_vmem_bytes(E, heads, head_dim, block_q, block_k) > budget:
        if block_k >= block_q and block_k > 8:
            nb = _pick_tile(T, max(8, block_k // 2))
            if nb < block_k:
                block_k = nb
                continue
        if block_q > 8:
            nb = _pick_tile(T, max(8, block_q // 2))
            if nb < block_q:
                block_q = nb
                continue
        if block_k > 8:
            nb = _pick_tile(T, max(8, block_k // 2))
            if nb < block_k:
                block_k = nb
                continue
        break

    n_r, n_q, n_k = T // block_r, T // block_q, T // block_k

    # ---- parameters: PyTorch nn.Linear stores W as [E_out, E_in]; pre-transpose
    # to [E_in, E_out], fold the softmax scale into the Q projection, and stack
    # the three projections so each weight is one grid-selected block.
    w_in = jnp.stack([params["wq"].T * scale, params["wk"].T, params["wv"].T]
                     ).astype(jnp.bfloat16)                          # (3, E, E)
    b_in = jnp.stack([params["bq"] * scale, params["bk"], params["bv"]]
                     ).astype(jnp.float32)                           # (3, 1, E)
    wo_t = params["wo"].T.astype(jnp.bfloat16)                       # (E, E)
    bo = params["bo"].astype(jnp.float32)                            # (1, E)

    # Inputs pre-cast to bf16 (halves the hot DMA stream) and stacked so the
    # projection grid selects Q/K/V purely via the index map.
    x = jnp.stack([Q, K, V]).astype(jnp.bfloat16).reshape(3 * B, T, E)

    # ---- pass 1: Q/K/V projections -> head-major bf16 (3*B, H, T, D).
    proj_kernel = functools.partial(_qkv_proj_kernel,
                                    heads=heads, head_dim=head_dim)
    qkv_h = pl.pallas_call(
        proj_kernel,
        out_shape=jax.ShapeDtypeStruct((3 * B, heads, T, head_dim), jnp.bfloat16),
        grid_spec=pltpu.PrefetchScalarGridSpec(
            num_scalar_prefetch=0,
            grid=(3, B, n_r),
            in_specs=[
                pl.BlockSpec((1, block_r, E), lambda p, b, r: (p * B + b, r, 0)),
                pl.BlockSpec((1, E, E), lambda p, b, r: (p, 0, 0)),
                pl.BlockSpec((1, 1, E), lambda p, b, r: (p, 0, 0)),
            ],
            out_specs=pl.BlockSpec((1, heads, block_r, head_dim),
                                   lambda p, b, r: (p * B + b, 0, r, 0)),
        ),
        compiler_params=pltpu.CompilerParams(
            dimension_semantics=("parallel", "parallel", "parallel"),
            vmem_limit_bytes=budget),
    )(x, w_in, b_in)

    # ---- pass 2: flash attention + fused output projection.
    attn_kernel = functools.partial(_flash_attn_kernel,
                                    heads=heads, head_dim=head_dim)
    out = pl.pallas_call(
        attn_kernel,
        out_shape=jax.ShapeDtypeStruct((B, T, E), out_dtype),
        grid_spec=pltpu.PrefetchScalarGridSpec(
            num_scalar_prefetch=0,
            grid=(B, n_q, n_k),
            in_specs=[
                pl.BlockSpec((1, heads, block_q, head_dim),
                             lambda b, qi, ki: (b, 0, qi, 0)),             # Qh
                pl.BlockSpec((1, heads, block_k, head_dim),
                             lambda b, qi, ki: (B + b, 0, ki, 0)),         # Kh
                pl.BlockSpec((1, heads, block_k, head_dim),
                             lambda b, qi, ki: (2 * B + b, 0, ki, 0)),     # Vh
                pl.BlockSpec((E, E), lambda b, qi, ki: (0, 0)),            # Wo
                pl.BlockSpec((1, E), lambda b, qi, ki: (0, 0)),            # bo
            ],
            out_specs=pl.BlockSpec((1, block_q, E),
                                   lambda b, qi, ki: (b, qi, 0)),
            scratch_shapes=[
                pltpu.VMEM((heads, block_q, 1), jnp.float32),          # running max
                pltpu.VMEM((heads, block_q, 1), jnp.float32),          # running sum
                pltpu.VMEM((heads, block_q, head_dim), jnp.float32),   # running out
                pltpu.VMEM((block_q, E), jnp.float32),                 # head-concat stage
            ]),
        compiler_params=pltpu.CompilerParams(
            dimension_semantics=("parallel", "parallel", "arbitrary"),
            vmem_limit_bytes=budget),
    )(qkv_h, qkv_h, qkv_h, wo_t, bo)
    return out


# ----------------------------------------------------------------------------
# Pure-JAX f32 reference mirroring the PyTorch forward (mask=None, no dropout).
# ----------------------------------------------------------------------------
def _reference_forward(Q, K, V, params, *, heads):
    B, T, E = Q.shape
    D = E // heads
    q = Q @ params["wq"].T + params["bq"][0]
    k = K @ params["wk"].T + params["bk"][0]
    v = V @ params["wv"].T + params["bv"][0]
    q = q.reshape(B, T, heads, D)
    k = k.reshape(B, T, heads, D)
    v = v.reshape(B, T, heads, D)
    att = jnp.einsum("bqhd,bkhd->bhqk", q, k) / math.sqrt(D)
    att = jax.nn.softmax(att, axis=-1)
    out = jnp.einsum("bhqk,bkhd->bqhd", att, v).reshape(B, T, E)
    return out @ params["wo"].T + params["bo"][0]


if __name__ == "__main__":
    B, T, E, H = 2, 8, 32, 8

    key = jax.random.PRNGKey(0)
    keys = jax.random.split(key, 12)

    def init_linear(kw, kb, fan_in):
        bound = 1.0 / math.sqrt(fan_in)
        w = jax.random.uniform(kw, (E, E), jnp.float32, -bound, bound)
        b = jax.random.uniform(kb, (1, E), jnp.float32, -bound, bound)
        return w, b

    wq, bq = init_linear(keys[0], keys[1], E)
    wk, bk = init_linear(keys[2], keys[3], E)
    wv, bv = init_linear(keys[4], keys[5], E)
    wo, bo = init_linear(keys[6], keys[7], E)
    params = dict(wq=wq, bq=bq, wk=wk, bk=bk, wv=wv, bv=bv, wo=wo, bo=bo)

    Q = jax.random.normal(keys[8], (B, T, E), jnp.float32)
    K = jax.random.normal(keys[9], (B, T, E), jnp.float32)
    V = jax.random.normal(keys[10], (B, T, E), jnp.float32)

    out = attention_forward(Q, K, V, params, heads=H)
    out = jax.block_until_ready(out)

    ref = _reference_forward(Q, K, V, params, heads=H)
    assert out.shape == (B, T, E)
    # Kernel runs bf16 MXU math (f32 accumulation) and an approximate softmax
    # reciprocal, so compare against the pure-f32 reference at bf16 tolerance.
    assert jnp.allclose(out, ref, atol=4e-2, rtol=4e-2), "mismatch vs reference"

    print("KERNEL_OK")
</pallas_src>

<mosaic_0001>
module attributes {stable_mosaic.version = 11 : i64} {
  func.func @_qkv_proj_kernel(%arg0: i32, %arg1: i32, %arg2: i32, %arg3: memref<1x8x32xbf16, #tpu.memory_space<vmem>>, %arg4: memref<1x32x32xbf16, #tpu.memory_space<vmem>>, %arg5: memref<1x1x32xf32, #tpu.memory_space<vmem>>, %arg6: memref<1x8x8x4xbf16, #tpu.memory_space<vmem>>) attributes {dimension_semantics = [#tpu.dimension_semantics<parallel>, #tpu.dimension_semantics<parallel>, #tpu.dimension_semantics<parallel>], iteration_bounds = array<i64: 3, 2, 1>, scalar_prefetch = 0 : i64, scratch_operands = 0 : i64, tpu.core_type = #tpu.core_type<tc>, window_params = [{transform_indices = @transform_0, window_bounds = array<i64: 1, 8, 32>}, {transform_indices = @transform_1, window_bounds = array<i64: 1, 32, 32>}, {transform_indices = @transform_2, window_bounds = array<i64: 1, 1, 32>}, {transform_indices = @transform_3, window_bounds = array<i64: 1, 8, 8, 4>}]} {
    %c0 = arith.constant 0 : index
    %c0_0 = arith.constant 0 : index
    %c0_1 = arith.constant 0 : index
    %0 = vector.load %arg3[%c0, %c0_0, %c0_1] : memref<1x8x32xbf16, #tpu.memory_space<vmem>>, vector<1x8x32xbf16>
    %1 = vector.shape_cast %0 : vector<1x8x32xbf16> to vector<8x32xbf16>
    %c0_2 = arith.constant 0 : index
    %c0_3 = arith.constant 0 : index
    %c0_4 = arith.constant 0 : index
    %2 = vector.load %arg4[%c0_2, %c0_3, %c0_4] : memref<1x32x32xbf16, #tpu.memory_space<vmem>>, vector<1x32x32xbf16>
    %3 = vector.shape_cast %2 : vector<1x32x32xbf16> to vector<32x32xbf16>
    %cst = arith.constant dense<0.000000e+00> : vector<8x32xf32>
    %4 = tpu.matmul %1, %3, %cst {dimension_numbers = #tpu.dot_dimension_numbers<[1], [0], [0], [1], [0, 0, 1, 1], [], []>} : vector<8x32xbf16>, vector<32x32xbf16>, vector<8x32xf32> -> vector<8x32xf32>
    %c0_5 = arith.constant 0 : index
    %c0_6 = arith.constant 0 : index
    %c0_7 = arith.constant 0 : index
    %5 = vector.load %arg5[%c0_5, %c0_6, %c0_7] : memref<1x1x32xf32, #tpu.memory_space<vmem>>, vector<1x1x32xf32>
    %6 = vector.shape_cast %5 : vector<1x1x32xf32> to vector<1x32xf32>
    %7 = vector.broadcast %6 : vector<1x32xf32> to vector<8x32xf32>
    %8 = arith.addf %4, %7 : vector<8x32xf32>
    %9 = arith.truncf %8 : vector<8x32xf32> to vector<8x32xbf16>
    %10 = vector.extract_strided_slice %9 {offsets = [0, 0], sizes = [8, 4], strides = [1, 1]} : vector<8x32xbf16> to vector<8x4xbf16>
    %c0_8 = arith.constant 0 : index
    %c0_9 = arith.constant 0 : index
    %c0_10 = arith.constant 0 : index
    %c0_11 = arith.constant 0 : index
    %11 = vector.load %arg6[%c0_8, %c0_9, %c0_10, %c0_11] : memref<1x8x8x4xbf16, #tpu.memory_space<vmem>>, vector<1x1x8x4xbf16>
    %12 = vector.shape_cast %11 : vector<1x1x8x4xbf16> to vector<8x4xbf16>
    %13 = vector.shape_cast %10 : vector<8x4xbf16> to vector<1x1x8x4xbf16>
    tpu.vector_store %arg6[%c0_8, %c0_9, %c0_10, %c0_11], %13 {strides = array<i32>} : memref<1x8x8x4xbf16, #tpu.memory_space<vmem>>, vector<1x1x8x4xbf16>,
    %14 = vector.extract_strided_slice %9 {offsets = [0, 4], sizes = [8, 4], strides = [1, 1]} : vector<8x32xbf16> to vector<8x4xbf16>
    %c0_12 = arith.constant 0 : index
    %c1 = arith.constant 1 : index
    %c0_13 = arith.constant 0 : index
    %c0_14 = arith.constant 0 : index
    %15 = vector.load %arg6[%c0_12, %c1, %c0_13, %c0_14] : memref<1x8x8x4xbf16, #tpu.memory_space<vmem>>, vector<1x1x8x4xbf16>
    %16 = vector.shape_cast %15 : vector<1x1x8x4xbf16> to vector<8x4xbf16>
    %17 = vector.shape_cast %14 : vector<8x4xbf16> to vector<1x1x8x4xbf16>
    tpu.vector_store %arg6[%c0_12, %c1, %c0_13, %c0_14], %17 {strides = array<i32>} : memref<1x8x8x4xbf16, #tpu.memory_space<vmem>>, vector<1x1x8x4xbf16>,
    %18 = vector.extract_strided_slice %9 {offsets = [0, 8], sizes = [8, 4], strides = [1, 1]} : vector<8x32xbf16> to vector<8x4xbf16>
    %c0_15 = arith.constant 0 : index
    %c2 = arith.constant 2 : index
    %c0_16 = arith.constant 0 : index
    %c0_17 = arith.constant 0 : index
    %19 = vector.load %arg6[%c0_15, %c2, %c0_16, %c0_17] : memref<1x8x8x4xbf16, #tpu.memory_space<vmem>>, vector<1x1x8x4xbf16>
    %20 = vector.shape_cast %19 : vector<1x1x8x4xbf16> to vector<8x4xbf16>
    %21 = vector.shape_cast %18 : vector<8x4xbf16> to vector<1x1x8x4xbf16>
    tpu.vector_store %arg6[%c0_15, %c2, %c0_16, %c0_17], %21 {strides = array<i32>} : memref<1x8x8x4xbf16, #tpu.memory_space<vmem>>, vector<1x1x8x4xbf16>,
    %22 = vector.extract_strided_slice %9 {offsets = [0, 12], sizes = [8, 4], strides = [1, 1]} : vector<8x32xbf16> to vector<8x4xbf16>
    %c0_18 = arith.constant 0 : index
    %c3 = arith.constant 3 : index
    %c0_19 = arith.constant 0 : index
    %c0_20 = arith.constant 0 : index
    %23 = vector.load %arg6[%c0_18, %c3, %c0_19, %c0_20] : memref<1x8x8x4xbf16, #tpu.memory_space<vmem>>, vector<1x1x8x4xbf16>
    %24 = vector.shape_cast %23 : vector<1x1x8x4xbf16> to vector<8x4xbf16>
    %25 = vector.shape_cast %22 : vector<8x4xbf16> to vector<1x1x8x4xbf16>
    tpu.vector_store %arg6[%c0_18, %c3, %c0_19, %c0_20], %25 {strides = array<i32>} : memref<1x8x8x4xbf16, #tpu.memory_space<vmem>>, vector<1x1x8x4xbf16>,
    %26 = vector.extract_strided_slice %9 {offsets = [0, 16], sizes = [8, 4], strides = [1, 1]} : vector<8x32xbf16> to vector<8x4xbf16>
    %c0_21 = arith.constant 0 : index
    %c4 = arith.constant 4 : index
    %c0_22 = arith.constant 0 : index
    %c0_23 = arith.constant 0 : index
    %27 = vector.load %arg6[%c0_21, %c4, %c0_22, %c0_23] : memref<1x8x8x4xbf16, #tpu.memory_space<vmem>>, vector<1x1x8x4xbf16>
    %28 = vector.shape_cast %27 : vector<1x1x8x4xbf16> to vector<8x4xbf16>
    %29 = vector.shape_cast %26 : vector<8x4xbf16> to vector<1x1x8x4xbf16>
    tpu.vector_store %arg6[%c0_21, %c4, %c0_22, %c0_23], %29 {strides = array<i32>} : memref<1x8x8x4xbf16, #tpu.memory_space<vmem>>, vector<1x1x8x4xbf16>,
    %30 = vector.extract_strided_slice %9 {offsets = [0, 20], sizes = [8, 4], strides = [1, 1]} : vector<8x32xbf16> to vector<8x4xbf16>
    %c0_24 = arith.constant 0 : index
    %c5 = arith.constant 5 : index
    %c0_25 = arith.constant 0 : index
    %c0_26 = arith.constant 0 : index
    %31 = vector.load %arg6[%c0_24, %c5, %c0_25, %c0_26] : memref<1x8x8x4xbf16, #tpu.memory_space<vmem>>, vector<1x1x8x4xbf16>
    %32 = vector.shape_cast %31 : vector<1x1x8x4xbf16> to vector<8x4xbf16>
    %33 = vector.shape_cast %30 : vector<8x4xbf16> to vector<1x1x8x4xbf16>
    tpu.vector_store %arg6[%c0_24, %c5, %c0_25, %c0_26], %33 {strides = array<i32>} : memref<1x8x8x4xbf16, #tpu.memory_space<vmem>>, vector<1x1x8x4xbf16>,
    %34 = vector.extract_strided_slice %9 {offsets = [0, 24], sizes = [8, 4], strides = [1, 1]} : vector<8x32xbf16> to vector<8x4xbf16>
    %c0_27 = arith.constant 0 : index
    %c6 = arith.constant 6 : index
    %c0_28 = arith.constant 0 : index
    %c0_29 = arith.constant 0 : index
    %35 = vector.load %arg6[%c0_27, %c6, %c0_28, %c0_29] : memref<1x8x8x4xbf16, #tpu.memory_space<vmem>>, vector<1x1x8x4xbf16>
    %36 = vector.shape_cast %35 : vector<1x1x8x4xbf16> to vector<8x4xbf16>
    %37 = vector.shape_cast %34 : vector<8x4xbf16> to vector<1x1x8x4xbf16>
    tpu.vector_store %arg6[%c0_27, %c6, %c0_28, %c0_29], %37 {strides = array<i32>} : memref<1x8x8x4xbf16, #tpu.memory_space<vmem>>, vector<1x1x8x4xbf16>,
    %38 = vector.extract_strided_slice %9 {offsets = [0, 28], sizes = [8, 4], strides = [1, 1]} : vector<8x32xbf16> to vector<8x4xbf16>
    %c0_30 = arith.constant 0 : index
    %c7 = arith.constant 7 : index
    %c0_31 = arith.constant 0 : index
    %c0_32 = arith.constant 0 : index
    %39 = vector.load %arg6[%c0_30, %c7, %c0_31, %c0_32] : memref<1x8x8x4xbf16, #tpu.memory_space<vmem>>, vector<1x1x8x4xbf16>
    %40 = vector.shape_cast %39 : vector<1x1x8x4xbf16> to vector<8x4xbf16>
    %41 = vector.shape_cast %38 : vector<8x4xbf16> to vector<1x1x8x4xbf16>
    tpu.vector_store %arg6[%c0_30, %c7, %c0_31, %c0_32], %41 {strides = array<i32>} : memref<1x8x8x4xbf16, #tpu.memory_space<vmem>>, vector<1x1x8x4xbf16>,
    return
  }
  func.func @transform_0(%arg0: i32, %arg1: i32, %arg2: i32) -> (i32, i32, i32) {
    %c2_i32 = arith.constant 2 : i32
    %0 = arith.muli %arg0, %c2_i32 : i32
    %1 = arith.addi %0, %arg1 : i32
    %c0_i32 = arith.constant 0 : i32
    %c0_i32_0 = arith.constant 0 : i32
    return %1, %arg2, %c0_i32 : i32, i32, i32
  }
  func.func @transform_1(%arg0: i32, %arg1: i32, %arg2: i32) -> (i32, i32, i32) {
    %c0_i32 = arith.constant 0 : i32
    %c0_i32_0 = arith.constant 0 : i32
    %c0_i32_1 = arith.constant 0 : i32
    return %arg0, %c0_i32, %c0_i32_0 : i32, i32, i32
  }
  func.func @transform_2(%arg0: i32, %arg1: i32, %arg2: i32) -> (i32, i32, i32) {
    %c0_i32 = arith.constant 0 : i32
    %c0_i32_0 = arith.constant 0 : i32
    %c0_i32_1 = arith.constant 0 : i32
    return %arg0, %c0_i32, %c0_i32_0 : i32, i32, i32
  }
  func.func @transform_3(%arg0: i32, %arg1: i32, %arg2: i32) -> (i32, i32, i32, i32) {
    %c2_i32 = arith.constant 2 : i32
    %0 = arith.muli %arg0, %c2_i32 : i32
    %1 = arith.addi %0, %arg1 : i32
    %c0_i32 = arith.constant 0 : i32
    %c0_i32_0 = arith.constant 0 : i32
    %c0_i32_1 = arith.constant 0 : i32
    return %1, %c0_i32, %arg2, %c0_i32_0 : i32, i32, i32, i32
  }
}

</mosaic_0001>

<bundles_post_ra>
// kernel: tpu_custom_call.1
= control target key start
LH: loop header
LB: loop body
LE: loop exit
PB: predicated region body
PF: predicated region fallthrough
CT: control target
= control target key end

     0   :  { %s1157_s0 = inlined_call_operand.hbm [shape: bf16[6,8,32], index: 0, kind: input, shape index: {}]   ;;  %s1158_s1 = inlined_call_operand.hbm [shape: bf16[3,32,32], index: 1, kind: input, shape index: {}]   ;;  %s1159_s2 = inlined_call_operand.vmem [shape: f32[3,1,32], index: 2, kind: input, shape index: {}]   ;;  %s1160_s3 = inlined_call_operand.vmem [shape: bf16[6,8,8,4], index: 3, kind: output, shape index: {}]  }
   0x1   :  { %1164 = sst [smem:[#allocation9_spill]] %s1157_s0 }
   0x2   :  { %8 = vsyncpa [#allocation3], 0 }
   0x3   :  { %10 = vsyncpa [#allocation3 + $0x1], 0 }
   0x4   :  { %11 = vsyncpa [#allocation5], 0 }
   0x5   :  { %13 = vsyncpa [#allocation5 + $0x1], 0  ;;  %s886_s12 = smov 0   ;;  %s888_s13 = smov 0  }
   0x6   :  { %s890_s14 = smov 0   ;;  %s892_s15 = smov 0  }
   0x7   :  { %s894_s16 = smov 0   ;;  %s896_s17 = smov 0  }
   0x8   :  { %s898_s18 = smov 0   ;;  %s900_s19 = smov 0  }
   0x9   :  { %s902_s20 = smov 0   ;;  %s904_s21 = smov 0  }
   0xa   :  { %s906_s22 = smov 0  }
   0xb LB: > { %s536_s23 = sadd.s32 4294967295, %s851_s22   ;;  %s34_s24 = sadd.s32 1, %s843_s20  ;;  %s851_s22 = sphi %s906_s22, %s19_s22   ;;  %s847_s21 = sphi %s904_s21, %s1188_s21   ;;  %s843_s20 = sphi %s902_s20, %s1187_s20   ;;  %s839_s19 = sphi %s900_s19, %s1186_s19   ;;  %s835_s18 = sphi %s898_s18, %s1185_s18   ;;  %s831_s17 = sphi %s896_s17, %s1184_s17   ;;  %s827_s16 = sphi %s894_s16, %s1183_s16   ;;  %s823_s15 = sphi %s892_s15, %s1182_s15   ;;  %s819_s14 = sphi %s890_s14, %s1181_s14   ;;  %s815_s13 = sphi %s888_s13, %s1180_s13   ;;  %s811_s12 = sphi %s886_s12, %s1179_s12  }
   0xc   : > { %p36_p0 = scmp.ge.s32.totalorder %s34_s24, 2  ;;  %s38_s25 = sadd.s32 1, %s847_s21 }
   0xd   : > { %s538_s26 = sshll.u32 %s847_s21, 1  ;;  %s51_s27 = sadd.s32 1, %s831_s17 }
   0xe   : > { %s1190_s24 = smov (%p36_p0, %s34_s24), 0  ;;  %s1192_s25 = smov (!%p36_p0, %s38_s25), %s847_s21 }
   0xf   : > { %s43_s28 = sadd.s32 %s843_s20, %s538_s26  ;;  %p58_p1 = scmp.ne.s32.totalorder %s831_s17, %s827_s16 }
  0x10   : > { %p40_p2 = scmp.ge.s32.totalorder %s1192_s25, 3  ;;  %p59_p3 = scmp.eq.s32.totalorder %s851_s22, 0 }
  0x11   : > { %p64_p4 = scmp.ne.s32.totalorder %s827_s16, %s823_s15  ;;  %p952_p5 = scmp.eq.s32.totalorder %s536_s23, 0 }
  0x12   : > { %s1194_s25 = smov (%p40_p2, %s1192_s25), 0  ;;  %p960_p6 = por %p59_p3, %p58_p1 }
  0x13   : > { %1166 = sst [smem:[#allocation8_spill]] %s1194_s25  ;;  %p966_p7 = por %p952_p5, %p64_p4 }
  0x14   : > { %s539_s5 = sshll.u32 %s1194_s25, 1  ;;  %s74_s6 = ssub.s32 %s847_s21, %s1194_s25 }
  0x15   : > { %s1168_s4 = scalar_select %p966_p7, 1, 0 }
  0x16   : > { %s45_s7 = sadd.s32 %s539_s5, %s1190_s24  ;;  %p75_p8 = scmp.eq.s32.totalorder %s74_s6, 0 }
  0x17   : > { %s46_s8 = ssub.s32 %s43_s28, %s45_s7  ;;  %s77_s9 = sadd.s32 1, %s819_s14 }
  0x18   : > { %p49_p9 = scmp.eq.s32.totalorder %s46_s8, 0  ;;  %p84_p10 = scmp.ne.s32.totalorder %s819_s14, %s815_s13 }
  0x19   : > { %s978_s10 = scalar_select %p75_p8, %s819_s14, %s77_s9  }
  0x1a   : > { %s981_s11 = scalar_select %p49_p9, %s831_s17, %s51_s27  }
  0x1b   : > { %p86_p11 = por %p84_p10, %p59_p3  ;;  %p90_p12 = scmp.ne.s32.totalorder %s815_s13, %s811_s12 }
  0x1c   : > { %p595_p13 = scmp.lt.s32.totalorder %s851_s22, 6  ;;  %s172_s23 = sand.u32 1, %s831_s17  }
  0x1d   : > { %p990_p0 = por %p90_p12, %p952_p5  ;;  %s544_s26 = sshll.u32 %s172_s23, 2 }
  0x1e   : > { %s546_s5 = sshll.u32 %s43_s28, 6  ;;  %s1170_s0 = sld [smem:[#allocation9_spill]] }
  0x1f   : > { %s1169_s15 = scalar_select %p990_p0, 1, 0 }
  0x20   : > { %s176_s27 = scalar_lea.vmem [#allocation2], %s544_s26  ;;  %p1004_p1 = pnand %p595_p13, %p960_p6 }
  0x21   : > { %s186_s9 = sshll.u32 %s176_s27, 4  ;;  %p1008_p2 = pnand %p595_p13, %p86_p11  ;;  %s1000_s9 = int_to_ptr.vmem [resolvable:$true] %s186_s9 }
  0x22   : > { %s173_s29 = scalar_lea.sflag [#allocation3], %s172_s23  ;;  %p699_p8 = pneg %p1004_p1 }
  0x24   : > { %s998_s8 = scalar_lea.hbm %s1170_s0, %s546_s5  ;;  %s702_s6 = scalar_lea.hbm %s1170_s0, 384 }
  0x25   : > { %s697_s5 = scalar_lea.hbm %s998_s8, 64  ;;  %p703_p10 = scmp.lt.u32.totalorder %s998_s8, %s1170_s0 }
  0x26   : > { %p698_p5 = scmp.ne.s32.totalorder %s998_s8, %s697_s5  ;;  %p704_p11 = scmp.lt.u32.totalorder %s702_s6, %s697_s5 }
  0x27   : > { %p706_p13 = scmp.lt.u32.totalorder %s697_s5, %s998_s8 }
  0x28   : > { %p700_p9 = pnand %p699_p8, %p698_p5  ;;  %p705_p12 = por %p704_p11, %p703_p10 }
  0x2a   : > { %p701_p6 = pneg %p700_p9  ;;  %p707_p3 = por %p706_p13, %p705_p12 }
  0x2c   : > { %p708_p4 = pnand %p707_p3, %p701_p6 }
  0x2e   : > { %711 = shalt.err (!%p708_p4)
}
  0x2f   : > { %s712_s23 = scalar_lea.vmem %s1000_s9, 64  ;;  %s853_s30 = smov [#allocation2]  }
  0x30   : > { %p713_p5 = scmp.ne.s32.totalorder %s1000_s9, %s712_s23  ;;  %s717_s26 = sshll.u32 %s853_s30, 4  ;;  %s718_s26 = int_to_ptr.vmem [resolvable:$false] %s717_s26 }
  0x31   : > { %s719_s7 = scalar_lea.vmem %s718_s26, 128  ;;  %p720_p7 = scmp.lt.s32.totalorder %s1000_s9, %s718_s26 }
  0x32   : > { %p715_p9 = pnand %p713_p5, %p699_p8  ;;  %p721_p10 = scmp.lt.s32.totalorder %s719_s7, %s712_s23 }
  0x34   : > { %p716_p0 = pneg %p715_p9  ;;  %p722_p11 = por %p721_p10, %p720_p7 }
  0x36   : > { %p723_p12 = pnand %p722_p11, %p716_p0 }
  0x38   : > { %726 = shalt.err (!%p723_p12)
}
  0x39   : > { %591 = dma.hbm_to_vmem [thread:$0]  (!%p1004_p1), %s998_s8, 64, %s1000_s9, %s173_s29  }
  0x3a   : > { %p1173_p3 = scmp.lt.s32.totalorder %s851_s22, 7  ;;  %p1174_p4 = scmp.ge.s32.totalorder %s851_s22, 1 }
  0x3b   : > { %s193_s6 = sand.u32 1, %s819_s14   ;;  %s570_s27 = sshll.u32 %s847_s21, 8 }
  0x3c   : > { %p1043_p8 = pnand %p1174_p4, %p1173_p3  ;;  %s547_s23 = sshll.u32 %s193_s6, 4 }
  0x3d   : > { %s1052_s26 = scalar_lea.hbm %s1158_s1, %s570_s27  ;;  %s197_s7 = scalar_lea.vmem [#allocation4], %s547_s23 }
  0x3e   : > { %s204_s8 = sshll.u32 %s197_s7, 4  ;;  %s1056_s9 = scalar_lea.sflag [#allocation5], %s193_s6  ;;  %s1054_s8 = int_to_ptr.vmem [resolvable:$true] %s204_s8 }
  0x3f   : > { %s727_s29 = scalar_lea.hbm %s1052_s26, 256  ;;  %p729_p0 = pneg %p1008_p2 }
  0x40   : > { %p728_p7 = scmp.ne.s32.totalorder %s1052_s26, %s727_s29  ;;  %s732_s12 = scalar_lea.hbm %s1158_s1, 768 }
  0x41   : > { %p733_p13 = scmp.lt.u32.totalorder %s1052_s26, %s1158_s1  ;;  %p734_p5 = scmp.lt.u32.totalorder %s732_s12, %s727_s29 }
  0x42   : > { %p730_p1 = pnand %p729_p0, %p728_p7  ;;  %p736_p10 = scmp.lt.u32.totalorder %s727_s29, %s1052_s26 }
  0x43   : > { %p735_p9 = por %p734_p5, %p733_p13 }
  0x44   : > { %p731_p6 = pneg %p730_p1 }
  0x45   : > { %p737_p11 = por %p736_p10, %p735_p9 }
  0x47   : > { %p738_p12 = pnand %p737_p11, %p731_p6 }
  0x49   : > { %741 = shalt.err (!%p738_p12)
}
  0x4a   : > { %s742_s6 = scalar_lea.vmem %s1054_s8, 256  ;;  %s854_s23 = smov [#allocation4]  }
  0x4b   : > { %p743_p3 = scmp.ne.s32.totalorder %s1054_s8, %s742_s6  ;;  %s747_s7 = sshll.u32 %s854_s23, 4  ;;  %s748_s7 = int_to_ptr.vmem [resolvable:$false] %s747_s7 }
  0x4c   : > { %s749_s0 = scalar_lea.vmem %s748_s7, 512  ;;  %p750_p1 = scmp.lt.s32.totalorder %s1054_s8, %s748_s7 }
  0x4d   : > { %p745_p4 = pnand %p743_p3, %p729_p0  ;;  %p751_p13 = scmp.lt.s32.totalorder %s749_s0, %s742_s6 }
  0x4f   : > { %p746_p7 = pneg %p745_p4  ;;  %p752_p5 = por %p751_p13, %p750_p1 }
  0x51   : > { %p753_p9 = pnand %p752_p5, %p746_p7 }
  0x53   : > { %756 = shalt.err (!%p753_p9)
}
  0x54   : > { %s855_s25 = smov 64   ;;  %s856_s29 = smov 4  }
  0x55   : > { %594 = dma.hbm_to_vmem [thread:$0]  (!%p1008_p2), %s1052_s26, 256, %s1054_s8, %s1056_s9, %s855_s25, %s855_s25, %s856_s29  }
  0x56   : > { %222 = sbr.rel (%p1043_p8) target bundleno = 451 (0x1c3), region = 32  ;;  %s224_s27 = sand.u32 (!%p1043_p8), 1, %s827_s16  }
  0x57   : > { %s551_s30 = sshll.u32 (!%p1043_p8), %s224_s27, 2  ;;  %s225_s12 = scalar_lea.sflag (!%p1043_p8), [#allocation3], %s224_s27 }
  0x58   : > { %s228_s6 = scalar_lea.vmem (!%p1043_p8), [#allocation2], %s551_s30  ;;  %p1176_p0 = scmp.ne.s32.totalorder (!%p1043_p8), %s1168_s4, 0 }
  0x5d   : > { %802 = dma.done.wait (%p1176_p0), %s225_s12, 64  }
  0x5e   : > { %804 = vsyncadd (%p1176_p0), %s225_s12, 4294967232  ;;  %s233_s23 = sand.u32 1, %s815_s13   ;;  %p1177_p2 = scmp.ne.s32.totalorder %s1169_s15, 0 }
  0x5f   : > { %s552_s7 = sshll.u32 %s233_s23, 4  ;;  %s234_s28 = scalar_lea.sflag [#allocation5], %s233_s23 }
  0x60   : > { %s237_s26 = scalar_lea.vmem [#allocation4], %s552_s7 }
  0x61   : > { %806 = dma.done.wait (%p1177_p2), %s234_s28, 256  }
  0x62   : > { %808 = vsyncadd (%p1177_p2), %s234_s28, 4294967040  ;;  %v857_v0 = vmov 0.0   ;;  %vm858_vm0 = vmmov 0   ;;  %v695_v1 = vld [vmem:[%s237_s26] sm:$0xff]   ;;  %v696_v2 = vld [vmem:[%s237_s26 + $0x8] sm:$0xff]   ;;  %vm315_vm1 = vcmask 261120  }
  0x63   : > { %576 = vmatprep.subr.bf16.mxu0 %v857_v0  ;;  %580 = vmatprep.mubr.msk.bf16.mxu0 %vm858_vm0, %v857_v0  ;;  %v291_v3 = vld [vmem:[%s228_s6] sm:$0xf]  ;;  %s553_s4 = sshll.u32 %s839_s19, 1  ;;  %p275_p8 = scmp.lt.s32.totalorder %s839_s19, 2  ;;  %vm360_vm2 = vcmask 27648  }
  0x64   : > { %577 = vmatpush3.bf16.msra.mxu0 %v695_v1  ;;  %s279_s15 = sadd.s32 %s835_s18, %s553_s4  ;;  %s859_s18 = smov 116  }
  0x65   : > { %578 = vmatprep.subr.bf16.mxu0 %v857_v0  ;;  %s1196_s19 = smov (!%p275_p8, %s839_s19), 2  ;;  %p280_p6 = scmp.lt.s32.totalorder %s279_s15, 5 }
  0x66   : > { %s277_s9 = scalar_lea.vmem %s1159_s2, %s1196_s19  ;;  %s860_s19 = smov 124  }
  0x67   : > { %s1198_s15 = smov (!%p280_p6, %s279_s15), 5  ;;  %v556_v4 = vld [vmem:[%s277_s9] ss:$0 sm:$0xff]  ;;  %s861_s30 = smov 112  }
  0x68   : > { %579 = vmatpush3.bf16.msra.mxu0 %v696_v2  ;;  %s571_s0 = sshll.u32 %s1198_s15, 5  ;;  %s862_s12 = smov 120  }
  0x69   : > { %s1106_s27 = scalar_lea.vmem %s1160_s3, %s571_s0  ;;  %s863_s6 = smov 104  }
  0x6a   : > { %s864_s23 = smov 108   ;;  %s865_s7 = smov 100  }
  0x6b   : > { %581 = vmatmul.mubr.msk.bf16.vlgmr.msra.gmra.mrb[0].mxu0 %vm315_vm1, %v291_v3 }
 0x13e   : > { %v353_v5 = vpop.f32.mrb[0].mxu0 }
 0x13f   : > { %v354_v6 = vadd.f32 %v556_v4, %v353_v5  ;;  %v582_v7 = vpop.f32.mrb[1].mxu0 }
 0x140   : > { %v356_v8 = vpop.f32.mrb[2].mxu0 }
 0x141   : > { %v359_v9 = vpack.c.bf16 %v354_v6, %v354_v6  ;;  %v583_v10 = vpop.f32.mrb[3].mxu0 }
 0x143   : > { %375 = vrot.lane.b32.xlu1 %v359_v9, %s859_s18  ;;  %365 = vrot.lane.b32.xlu0 %v359_v9, %s860_s19  ;;  %361 = vst.msk [vmem:[%s1106_s27] sm:$0xf] %vm360_vm2, %v359_v9 }
 0x147   : > { %380 = vrot.lane.b32.xlu1 %v359_v9, %s861_s30  ;;  %370 = vrot.lane.b32.xlu0 %v359_v9, %s862_s12 }
 0x14b   : > { %390 = vrot.lane.b32.xlu1 %v359_v9, %s863_s6  ;;  %385 = vrot.lane.b32.xlu0 %v359_v9, %s864_s23 }
 0x14f   : > { %395 = vrot.lane.b32.xlu0 %v359_v9, %s865_s7 }
 0x1b5   : > { %v376_v11 = vpop.permute.xlu1 %375  ;;  %v366_v12 = vpop.permute.xlu0 %365 }
 0x1b6   : > { %563 = vst.msk [vmem:[%s1106_s27 + $0xc] sm:$0xf] %vm360_vm2, %v376_v11  ;;  %561 = vst.msk [vmem:[%s1106_s27 + $0x4] sm:$0xf] %vm360_vm2, %v366_v12 }
 0x1b9   : > { %v381_v13 = vpop.permute.xlu1 %380  ;;  %v371_v14 = vpop.permute.xlu0 %370 }
 0x1ba   : > { %564 = vst.msk [vmem:[%s1106_s27 + $0x10] sm:$0xf] %vm360_vm2, %v381_v13  ;;  %562 = vst.msk [vmem:[%s1106_s27 + $0x8] sm:$0xf] %vm360_vm2, %v371_v14 }
 0x1bd   : > { %v391_v15 = vpop.permute.xlu1 %390  ;;  %v386_v16 = vpop.permute.xlu0 %385 }
 0x1be   : > { %566 = vst.msk [vmem:[%s1106_s27 + $0x18] sm:$0xf] %vm360_vm2, %v391_v15  ;;  %565 = vst.msk [vmem:[%s1106_s27 + $0x14] sm:$0xf] %vm360_vm2, %v386_v16 }
 0x1c1   : > { %v396_v17 = vpop.permute.xlu0 %395 }
 0x1c2   : > { %567 = vst.msk [vmem:[%s1106_s27 + $0x1c] sm:$0xf] %vm360_vm2, %v396_v17 }
 0x1c3 PF: > { %s19_s22 = sadd.s32 1, %s851_s22   ;;  %s1178_s28 = sld [smem:[#allocation8_spill]] }
 0x1c4   : > { %p16_p10 = scmp.ge.s32.totalorder %s19_s22, 8   ;;  %s1179_s12 = smov %s815_s13 }
 0x1c5   : > { %s1180_s13 = smov %s819_s14  ;;  %s1181_s14 = smov %s978_s10 }
 0x1c6   : > { %s1182_s15 = smov %s827_s16  ;;  %s1183_s16 = smov %s831_s17 }
 0x1c7   : > { %s1184_s17 = smov %s981_s11  ;;  %s1185_s18 = smov %s843_s20 }
 0x1c8   : > { %s1186_s19 = smov %s847_s21  ;;  %s1187_s20 = smov %s1190_s24 }
 0x1c9   : > { %s1188_s21 = smov %s1178_s28  ;;  %18 = sbr.rel (!%p16_p10) target bundleno = 11 (0xb), region = 95 }
 0x1d0   :  { %433 = vsyncpa [#allocation3], 1 }
 0x1d1   :  { %435 = vsyncpa [#allocation3 + $0x1], 1 }
 0x1d2   :  { %436 = vsyncpa [#allocation5], 1 }
 0x1d3   :  { %438 = vsyncpa [#allocation5 + $0x1], 1 }

</bundles_post_ra>
